<compile_context>
chip_gen: v6e
topology: v6e:2x2x1
jax: 0.10.0
libtpu: 0.0.40
codegen_flags: <defaults>
</compile_context>

<pallas_src>
import functools

import jax
import jax.numpy as jnp
from jax.experimental import pallas as pl
from jax.experimental.pallas import tpu as pltpu

BN_EPS = 1e-5
LANE = 128


def _round_up(n, m):
    return ((n + m - 1) // m) * m


def _vmem_capacity_bytes():
    """Per-generation VMEM capacity; conservative fallback if query fails."""
    try:
        return int(pltpu.get_tpu_info().vmem_capacity_bytes)
    except Exception:
        return 64 << 20  # v7x per-TensorCore VMEM (smallest current part)


# ---------------------------------------------------------------------------
# Kernel 1: whole-batch-resident (single invocation, no grid).
# ---------------------------------------------------------------------------
def _decoder_kernel(z_ref, w1_ref, w2_ref, w3_ref, w4_ref, vec_ref, out_ref,
                    *, h_p, no_p):
    """4 linears + 3 fused train-mode BN + ReLU + Tanh, whole batch in VMEM.

    vec_ref packs the live per-feature vectors into a single (8, c_max) tile:
      row 0: gamma1   row 1: beta1
      row 2: gamma2   row 3: beta2
      row 4: gamma3   row 5: beta3
      row 6: b4       row 7: zeros (sublane padding)
    Biases b1..b3 are omitted: train-mode BatchNorm subtracts the batch mean,
    so a per-feature constant bias cancels exactly.
    """
    vecs = vec_ref[...]  # (8, c_max) f32

    def matmul(x, w_ref):
        # Weights arrive already in the MXU compute dtype (bf16 or f32);
        # only the f32 BN output needs a cast for layers 2-4.
        return jnp.dot(x.astype(w_ref.dtype), w_ref[...],
                       preferred_element_type=jnp.float32)

    def bn_relu(h, g, be):
        # Training-mode BatchNorm1d, single sweep: sum / sum-of-squares,
        # biased variance, affine folded into one FMA.
        inv_n = 1.0 / h.shape[0]
        mean = jnp.sum(h, axis=0, keepdims=True) * inv_n
        ex2 = jnp.sum(h * h, axis=0, keepdims=True) * inv_n
        var = ex2 - mean * mean
        scale = g * jax.lax.rsqrt(var + BN_EPS)   # (1, C)
        shift = be - mean * scale                 # (1, C)
        return jnp.maximum(h * scale + shift, 0.0)

    z = z_ref[...]
    h = bn_relu(matmul(z, w1_ref), vecs[0:1, :h_p], vecs[1:2, :h_p])
    h = bn_relu(matmul(h, w2_ref), vecs[2:3, :h_p], vecs[3:4, :h_p])
    h = bn_relu(matmul(h, w3_ref), vecs[4:5, :h_p], vecs[5:6, :h_p])
    x = jnp.tanh(matmul(h, w4_ref) + vecs[6:7, :no_p])
    out_ref[...] = x.astype(out_ref.dtype)


# ---------------------------------------------------------------------------
# Kernel 2: batch-gridded, 4-sweep recompute for the chained train-mode BNs.
#   grid = (4 passes, batch tiles); weights stay VMEM-resident (constant block
#   index), z/out tiles are pipelined.  Pass p accumulates layer-(p+1) raw
#   statistics; layers < p+1 are recomputed with their (now complete) stats.
# ---------------------------------------------------------------------------
def _decoder_grid_kernel(z_ref, w1_ref, w2_ref, w3_ref, w4_ref, vec_ref,
                         out_ref, stats_ref, *, h_p, no_p, batch, batch_tile):
    p = pl.program_id(0)   # pass index (0..3), slow axis
    b = pl.program_id(1)   # batch-tile index, fast axis

    @pl.when(jnp.logical_and(p == 0, b == 0))
    def _init():
        stats_ref[...] = jnp.zeros_like(stats_ref)

    vecs = vec_ref[...]
    inv_n = jnp.float32(1.0 / batch)

    # Rows past the true batch (batch padded to a tile multiple) are masked
    # to zero after each BN so they never pollute later-layer statistics.
    row = jax.lax.broadcasted_iota(jnp.int32, (batch_tile, 1), 0) + b * batch_tile
    rmask = row < batch

    def matmul(x, w_ref):
        return jnp.dot(x.astype(w_ref.dtype), w_ref[...],
                       preferred_element_type=jnp.float32)

    def accumulate(h_raw, layer):
        stats_ref[2 * layer:2 * layer + 1, :] += jnp.sum(h_raw, axis=0,
                                                         keepdims=True)
        stats_ref[2 * layer + 1:2 * layer + 2, :] += jnp.sum(h_raw * h_raw,
                                                             axis=0,
                                                             keepdims=True)

    def bn_relu(h_raw, layer, g, be):
        mean = stats_ref[2 * layer:2 * layer + 1, :] * inv_n
        ex2 = stats_ref[2 * layer + 1:2 * layer + 2, :] * inv_n
        var = ex2 - mean * mean
        scale = g * jax.lax.rsqrt(var + BN_EPS)
        shift = be - mean * scale
        h = jnp.maximum(h_raw * scale + shift, 0.0)
        return jnp.where(rmask, h, 0.0)

    z = z_ref[...]
    h1_raw = matmul(z, w1_ref)

    @pl.when(p == 0)
    def _pass0():
        accumulate(h1_raw, 0)

    @pl.when(p >= 1)
    def _pass_ge1():
        h1 = bn_relu(h1_raw, 0, vecs[0:1, :h_p], vecs[1:2, :h_p])
        h2_raw = matmul(h1, w2_ref)

        @pl.when(p == 1)
        def _pass1():
            accumulate(h2_raw, 1)

        @pl.when(p >= 2)
        def _pass_ge2():
            h2 = bn_relu(h2_raw, 1, vecs[2:3, :h_p], vecs[3:4, :h_p])
            h3_raw = matmul(h2, w3_ref)

            @pl.when(p == 2)
            def _pass2():
                accumulate(h3_raw, 2)

            @pl.when(p == 3)
            def _pass3():
                h3 = bn_relu(h3_raw, 2, vecs[4:5, :h_p], vecs[5:6, :h_p])
                x = jnp.tanh(matmul(h3, w4_ref) + vecs[6:7, :no_p])
                out_ref[...] = x.astype(out_ref.dtype)


# ---------------------------------------------------------------------------
# Parameter preparation (hoisted out of the per-call hot path).
# ---------------------------------------------------------------------------
def prepare_decoder_params(params, *, compute_dtype=jnp.bfloat16):
    """Pad / pack / cast the Decoder parameters once; reuse across forwards.

    params: 14 arrays (W1,b1,g1,be1, W2,b2,g2,be2, W3,b3,g3,be3, W4,b4),
    W: [in, out], vectors: [1, out] (PyTorch layout).
    """
    (w1, b1, g1, be1, w2, b2, g2, be2, w3, b3, g3, be3, w4, b4) = params
    del b1, b2, b3  # exactly cancelled by the train-mode BatchNorm that follows

    n_z, hid = w1.shape
    n_out = w4.shape[1]
    nz_p = _round_up(n_z, LANE)
    h_p = _round_up(hid, LANE)
    no_p = _round_up(n_out, LANE)
    c_max = max(h_p, no_p)
    compute_dtype = jnp.dtype(compute_dtype)

    def pad2(a, rows, cols, dtype):
        a = jnp.asarray(a, jnp.float32)
        r, c = a.shape
        return jnp.pad(a, ((0, rows - r), (0, cols - c))).astype(dtype)

    # Lane-dense, zero-padded operands in the MXU compute dtype.  Padded lanes
    # provably stay zero through matmul / fused-BN / ReLU / tanh, so slicing
    # the output in the wrapper is exact.
    w1_p = pad2(w1, nz_p, h_p, compute_dtype)
    w2_p = pad2(w2, h_p, h_p, compute_dtype)
    w3_p = pad2(w3, h_p, h_p, compute_dtype)
    w4_p = pad2(w4, h_p, no_p, compute_dtype)

    # Pack the 7 live per-feature vectors into a single (8, c_max) f32 tile.
    vec_rows = [g1, be1, g2, be2, g3, be3, b4]
    packed = jnp.concatenate(
        [pad2(v.reshape(1, -1), 1, c_max, jnp.float32) for v in vec_rows]
        + [jnp.zeros((1, c_max), jnp.float32)],
        axis=0)

    return dict(w1=w1_p, w2=w2_p, w3=w3_p, w4=w4_p, vec=packed,
                dims=(n_z, hid, n_out, nz_p, h_p, no_p),
                compute_dtype=compute_dtype)


# ---------------------------------------------------------------------------
# Forward wrapper.
# ---------------------------------------------------------------------------
def decoder_forward(z, prepared, *, batch_tile=None, out_dtype=None,
                    interpret=False):
    """Decoder forward.  `prepared` comes from prepare_decoder_params().

    If the whole batch fits comfortably in VMEM (per-generation budget) a
    single-invocation kernel is used; otherwise (or if `batch_tile` is given)
    the batch-gridded kernel with multi-sweep BatchNorm statistics is used.
    """
    w1, w2, w3, w4 = prepared["w1"], prepared["w2"], prepared["w3"], prepared["w4"]
    vec = prepared["vec"]
    n_z, _hid, n_out, nz_p, h_p, no_p = prepared["dims"]
    compute_dtype = prepared["compute_dtype"]
    if out_dtype is None:
        out_dtype = (jnp.bfloat16 if compute_dtype == jnp.dtype(jnp.bfloat16)
                     else jnp.float32)

    batch, zn = z.shape
    assert zn == n_z, (zn, n_z)

    z_p = jnp.pad(z.astype(jnp.float32),
                  ((0, 0), (0, nz_p - n_z))).astype(compute_dtype)

    itemsize = jnp.dtype(compute_dtype).itemsize
    out_itemsize = jnp.dtype(out_dtype).itemsize
    weight_bytes = (w1.size + w2.size + w3.size + w4.size) * itemsize + vec.size * 4

    cap = _vmem_capacity_bytes()
    budget = int(cap * 0.75)   # ~48 MiB on v7x, ~96 MiB on v5e/v6e

    # ---- whole-batch-resident path -------------------------------------
    if batch_tile is None:
        act_bytes = 4 * batch * (3 * h_p + no_p)              # f32 intermediates
        io_bytes = (weight_bytes + batch * nz_p * itemsize
                    + batch * no_p * out_itemsize)
        needed = io_bytes + act_bytes + (2 << 20)             # no double-buffer
        if needed <= budget:
            cost = pl.CostEstimate(
                flops=2 * batch * (nz_p * h_p + 2 * h_p * h_p + h_p * no_p),
                transcendentals=batch * no_p + 3 * h_p,        # tanh + rsqrt
                bytes_accessed=io_bytes)
            vmem = pl.BlockSpec(memory_space=pltpu.MemorySpace.VMEM)
            out_p = pl.pallas_call(
                functools.partial(_decoder_kernel, h_p=h_p, no_p=no_p),
                out_shape=jax.ShapeDtypeStruct((batch, no_p), out_dtype),
                in_specs=[vmem] * 6,
                out_specs=vmem,
                compiler_params=pltpu.CompilerParams(
                    vmem_limit_bytes=int(min(max(needed, 16 << 20),
                                             cap * 0.9))),
                cost_estimate=cost,
                interpret=interpret,
            )(z_p, w1, w2, w3, w4, vec)
            return out_p[:, :n_out]
        # Too big for whole-batch residency: fall through to the gridded path
        # with a per-generation default tile.
        batch_tile = 1024 if cap >= (96 << 20) else 512

    # ---- batch-gridded path ---------------------------------------------
    batch_tile = min(_round_up(batch_tile, 16), _round_up(batch, 16))
    batch_pad = _round_up(batch, batch_tile)
    if batch_pad != batch:
        z_p = jnp.pad(z_p, ((0, batch_pad - batch), (0, 0)))
    nbt = batch_pad // batch_tile
    n_pass = 4

    tile_io = (batch_tile * nz_p * itemsize + batch_tile * no_p * out_itemsize)
    act_bytes = 4 * batch_tile * (nz_p + 3 * h_p + no_p)
    needed = weight_bytes + 2 * tile_io + act_bytes + 8 * h_p * 4 + (2 << 20)

    cost = pl.CostEstimate(
        flops=2 * batch_pad * (4 * nz_p * h_p + 5 * h_p * h_p + h_p * no_p),
        transcendentals=batch_pad * no_p + 6 * nbt * h_p,
        bytes_accessed=(weight_bytes + n_pass * batch_pad * nz_p * itemsize
                        + batch_pad * no_p * out_itemsize))

    grid_spec = pltpu.PrefetchScalarGridSpec(
        num_scalar_prefetch=0,
        grid=(n_pass, nbt),
        in_specs=[
            pl.BlockSpec((batch_tile, nz_p), lambda p, b: (b, 0)),
            pl.BlockSpec((nz_p, h_p), lambda p, b: (0, 0)),   # weights stay
            pl.BlockSpec((h_p, h_p), lambda p, b: (0, 0)),    # VMEM-resident
            pl.BlockSpec((h_p, h_p), lambda p, b: (0, 0)),
            pl.BlockSpec((h_p, no_p), lambda p, b: (0, 0)),
            pl.BlockSpec((8, vec.shape[1]), lambda p, b: (0, 0)),
        ],
        # Only the final pass produces output blocks; earlier passes park the
        # output index at block 0 so no garbage is written back.
        out_specs=pl.BlockSpec(
            (batch_tile, no_p),
            lambda p, b: (jnp.where(p == n_pass - 1, b, 0), 0)),
        scratch_shapes=[pltpu.VMEM((8, h_p), jnp.float32)],  # sum / sumsq x3
    )

    out_p = pl.pallas_call(
        functools.partial(_decoder_grid_kernel, h_p=h_p, no_p=no_p,
                          batch=batch, batch_tile=batch_tile),
        out_shape=jax.ShapeDtypeStruct((batch_pad, no_p), out_dtype),
        grid_spec=grid_spec,
        compiler_params=pltpu.CompilerParams(
            dimension_semantics=("arbitrary", "arbitrary"),
            vmem_limit_bytes=int(min(max(needed, 16 << 20), cap * 0.9))),
        cost_estimate=cost,
        interpret=interpret,
    )(z_p, w1, w2, w3, w4, vec)
    return out_p[:batch, :n_out]


# ---------------------------------------------------------------------------
# Bayesian-layer sampling + reference (plain JAX glue).
# ---------------------------------------------------------------------------
def _sample_bayes_linear(key, fan_in, fan_out, sigma_prior):
    """Deterministic reparameterized sample of an MLPLayer's weight & bias."""
    k_mu_w, k_eps_w, k_mu_b, k_eps_b = jax.random.split(key, 4)
    w_mu = 0.01 * jax.random.normal(k_mu_w, (fan_in, fan_out), jnp.float32)
    b_mu = 0.01 * jax.random.normal(k_mu_b, (1, fan_out), jnp.float32)
    rho = jnp.log(jnp.expm1(jnp.float32(sigma_prior)))   # softplus(rho) ~ sigma
    w_sigma = jax.nn.softplus(rho)
    eps_w = jax.random.normal(k_eps_w, (fan_in, fan_out), jnp.float32)
    eps_b = jax.random.normal(k_eps_b, (1, fan_out), jnp.float32)
    return w_mu + w_sigma * eps_w, b_mu + w_sigma * eps_b


def make_decoder_params(key, n_z, dim_h, n_input, sigma_prior=0.1):
    hid = 2 * dim_h
    keys = jax.random.split(key, 4)
    params = []
    dims = [(n_z, hid), (hid, hid), (hid, hid), (hid, n_input)]
    for i, (fi, fo) in enumerate(dims):
        w, b = _sample_bayes_linear(keys[i], fi, fo, sigma_prior)
        params.append(w)
        params.append(b)
        if i < 3:  # BN affine params (gamma=1, beta=0 at init), shape (1, C)
            params.append(jnp.ones((1, fo), jnp.float32))
            params.append(jnp.zeros((1, fo), jnp.float32))
    return params


def decoder_reference(z, params):
    """Plain-JAX reference matching the PyTorch module (biases included)."""
    (w1, b1, g1, be1, w2, b2, g2, be2, w3, b3, g3, be3, w4, b4) = params

    def bn_relu(h, g, be):
        m = jnp.mean(h, axis=0, keepdims=True)
        v = jnp.mean((h - m) ** 2, axis=0, keepdims=True)
        return jnp.maximum((h - m) / jnp.sqrt(v + BN_EPS) * g + be, 0.0)

    h = bn_relu(z @ w1 + b1, g1, be1)
    h = bn_relu(h @ w2 + b2, g2, be2)
    h = bn_relu(h @ w3 + b3, g3, be3)
    return jnp.tanh(h @ w4 + b4)


if __name__ == "__main__":
    # Small shapes consistent with the module: args.n_z=8, args.dim_h=16,
    # args.n_input=64, batch=8.
    batch, n_z, dim_h, n_input = 8, 8, 16, 64
    key = jax.random.PRNGKey(0)
    k_z, k_p, k_z2 = jax.random.split(key, 3)
    z = jax.random.normal(k_z, (batch, n_z), jnp.float32)
    params = make_decoder_params(k_p, n_z, dim_h, n_input, sigma_prior=0.1)
    ref = decoder_reference(z, params)

    # Exact-semantics path: f32 MXU operands, whole-batch-resident kernel.
    prep_f32 = prepare_decoder_params(params, compute_dtype=jnp.float32)
    out_f32 = jax.block_until_ready(decoder_forward(z, prep_f32))
    assert out_f32.shape == (batch, n_input), out_f32.shape
    err_f32 = float(jnp.max(jnp.abs(out_f32.astype(jnp.float32) - ref)))
    assert err_f32 < 1e-4, err_f32

    # Throughput path: bf16 weights/inputs on the MXU, f32 accumulate/BN,
    # bf16 output writeback.
    prep_bf16 = prepare_decoder_params(params, compute_dtype=jnp.bfloat16)
    out_bf16 = jax.block_until_ready(decoder_forward(z, prep_bf16))
    assert out_bf16.shape == (batch, n_input), out_bf16.shape
    err_bf16 = float(jnp.max(jnp.abs(out_bf16.astype(jnp.float32) - ref)))
    assert err_bf16 < 5e-2, err_bf16

    # Batch-gridded path (pipelined z/out, VMEM-resident weights, multi-sweep
    # BN stats); batch deliberately not a tile multiple to exercise masking.
    big_batch = 500
    z_big = jax.random.normal(k_z2, (big_batch, n_z), jnp.float32)
    ref_big = decoder_reference(z_big, params)

    out_grid = jax.block_until_ready(
        decoder_forward(z_big, prep_f32, batch_tile=128))
    assert out_grid.shape == (big_batch, n_input), out_grid.shape
    err_grid = float(jnp.max(jnp.abs(out_grid.astype(jnp.float32) - ref_big)))
    assert err_grid < 1e-3, err_grid

    out_grid_bf16 = jax.block_until_ready(
        decoder_forward(z_big, prep_bf16, batch_tile=128))
    err_gb = float(jnp.max(jnp.abs(out_grid_bf16.astype(jnp.float32) - ref_big)))
    assert err_gb < 5e-2, err_gb

    print("KERNEL_OK")
</pallas_src>

<mosaic_0001>
module attributes {stable_mosaic.version = 11 : i64} {
  func.func @_decoder_kernel(%arg0: memref<8x128xf32, #tpu.memory_space<vmem>>, %arg1: memref<128x128xf32, #tpu.memory_space<vmem>>, %arg2: memref<128x128xf32, #tpu.memory_space<vmem>>, %arg3: memref<128x128xf32, #tpu.memory_space<vmem>>, %arg4: memref<128x128xf32, #tpu.memory_space<vmem>>, %arg5: memref<8x128xf32, #tpu.memory_space<vmem>>, %arg6: memref<8x128xf32, #tpu.memory_space<vmem>>) attributes {dimension_semantics = [], scalar_prefetch = 0 : i64, scratch_operands = 0 : i64, tpu.core_type = #tpu.core_type<tc>} {
    %c0 = arith.constant 0 : index
    %c0_0 = arith.constant 0 : index
    %0 = vector.load %arg5[%c0, %c0_0] : memref<8x128xf32, #tpu.memory_space<vmem>>, vector<8x128xf32>
    %c0_1 = arith.constant 0 : index
    %c0_2 = arith.constant 0 : index
    %1 = vector.load %arg0[%c0_1, %c0_2] : memref<8x128xf32, #tpu.memory_space<vmem>>, vector<8x128xf32>
    %c0_3 = arith.constant 0 : index
    %c0_4 = arith.constant 0 : index
    %2 = vector.load %arg1[%c0_3, %c0_4] : memref<128x128xf32, #tpu.memory_space<vmem>>, vector<128x128xf32>
    %cst = arith.constant dense<0.000000e+00> : vector<8x128xf32>
    %3 = tpu.matmul %1, %2, %cst {dimension_numbers = #tpu.dot_dimension_numbers<[1], [0], [0], [1], [0, 0, 1, 1], [], []>} : vector<8x128xf32>, vector<128x128xf32>, vector<8x128xf32> -> vector<8x128xf32>
    %4 = vector.extract_strided_slice %0 {offsets = [0, 0], sizes = [1, 128], strides = [1, 1]} : vector<8x128xf32> to vector<1x128xf32>
    %5 = vector.extract_strided_slice %0 {offsets = [1, 0], sizes = [1, 128], strides = [1, 1]} : vector<8x128xf32> to vector<1x128xf32>
    %cst_5 = arith.constant dense<0.000000e+00> : vector<128xf32>
    %6 = vector.multi_reduction <add>, %3, %cst_5 [0] : vector<8x128xf32> to vector<128xf32>
    %7 = vector.shape_cast %6 : vector<128xf32> to vector<1x128xf32>
    %cst_6 = arith.constant 1.250000e-01 : f32
    %8 = vector.broadcast %cst_6 : f32 to vector<1x128xf32>
    %9 = arith.mulf %7, %8 : vector<1x128xf32>
    %10 = arith.mulf %3, %3 : vector<8x128xf32>
    %cst_7 = arith.constant dense<0.000000e+00> : vector<128xf32>
    %11 = vector.multi_reduction <add>, %10, %cst_7 [0] : vector<8x128xf32> to vector<128xf32>
    %12 = vector.shape_cast %11 : vector<128xf32> to vector<1x128xf32>
    %cst_8 = arith.constant 1.250000e-01 : f32
    %13 = vector.broadcast %cst_8 : f32 to vector<1x128xf32>
    %14 = arith.mulf %12, %13 : vector<1x128xf32>
    %15 = arith.mulf %9, %9 : vector<1x128xf32>
    %16 = arith.subf %14, %15 : vector<1x128xf32>
    %cst_9 = arith.constant 9.99999974E-6 : f32
    %17 = vector.broadcast %cst_9 : f32 to vector<1x128xf32>
    %18 = arith.addf %16, %17 : vector<1x128xf32>
    %19 = math.rsqrt %18 : vector<1x128xf32>
    %20 = arith.mulf %4, %19 : vector<1x128xf32>
    %21 = arith.mulf %9, %20 : vector<1x128xf32>
    %22 = arith.subf %5, %21 : vector<1x128xf32>
    %23 = vector.broadcast %20 : vector<1x128xf32> to vector<8x128xf32>
    %24 = arith.mulf %3, %23 : vector<8x128xf32>
    %25 = vector.broadcast %22 : vector<1x128xf32> to vector<8x128xf32>
    %26 = arith.addf %24, %25 : vector<8x128xf32>
    %cst_10 = arith.constant 0.000000e+00 : f32
    %27 = vector.broadcast %cst_10 : f32 to vector<8x128xf32>
    %28 = arith.maximumf %26, %27 : vector<8x128xf32>
    %c0_11 = arith.constant 0 : index
    %c0_12 = arith.constant 0 : index
    %29 = vector.load %arg2[%c0_11, %c0_12] : memref<128x128xf32, #tpu.memory_space<vmem>>, vector<128x128xf32>
    %cst_13 = arith.constant dense<0.000000e+00> : vector<8x128xf32>
    %30 = tpu.matmul %28, %29, %cst_13 {dimension_numbers = #tpu.dot_dimension_numbers<[1], [0], [0], [1], [0, 0, 1, 1], [], []>} : vector<8x128xf32>, vector<128x128xf32>, vector<8x128xf32> -> vector<8x128xf32>
    %31 = vector.extract_strided_slice %0 {offsets = [2, 0], sizes = [1, 128], strides = [1, 1]} : vector<8x128xf32> to vector<1x128xf32>
    %32 = vector.extract_strided_slice %0 {offsets = [3, 0], sizes = [1, 128], strides = [1, 1]} : vector<8x128xf32> to vector<1x128xf32>
    %cst_14 = arith.constant dense<0.000000e+00> : vector<128xf32>
    %33 = vector.multi_reduction <add>, %30, %cst_14 [0] : vector<8x128xf32> to vector<128xf32>
    %34 = vector.shape_cast %33 : vector<128xf32> to vector<1x128xf32>
    %cst_15 = arith.constant 1.250000e-01 : f32
    %35 = vector.broadcast %cst_15 : f32 to vector<1x128xf32>
    %36 = arith.mulf %34, %35 : vector<1x128xf32>
    %37 = arith.mulf %30, %30 : vector<8x128xf32>
    %cst_16 = arith.constant dense<0.000000e+00> : vector<128xf32>
    %38 = vector.multi_reduction <add>, %37, %cst_16 [0] : vector<8x128xf32> to vector<128xf32>
    %39 = vector.shape_cast %38 : vector<128xf32> to vector<1x128xf32>
    %cst_17 = arith.constant 1.250000e-01 : f32
    %40 = vector.broadcast %cst_17 : f32 to vector<1x128xf32>
    %41 = arith.mulf %39, %40 : vector<1x128xf32>
    %42 = arith.mulf %36, %36 : vector<1x128xf32>
    %43 = arith.subf %41, %42 : vector<1x128xf32>
    %cst_18 = arith.constant 9.99999974E-6 : f32
    %44 = vector.broadcast %cst_18 : f32 to vector<1x128xf32>
    %45 = arith.addf %43, %44 : vector<1x128xf32>
    %46 = math.rsqrt %45 : vector<1x128xf32>
    %47 = arith.mulf %31, %46 : vector<1x128xf32>
    %48 = arith.mulf %36, %47 : vector<1x128xf32>
    %49 = arith.subf %32, %48 : vector<1x128xf32>
    %50 = vector.broadcast %47 : vector<1x128xf32> to vector<8x128xf32>
    %51 = arith.mulf %30, %50 : vector<8x128xf32>
    %52 = vector.broadcast %49 : vector<1x128xf32> to vector<8x128xf32>
    %53 = arith.addf %51, %52 : vector<8x128xf32>
    %cst_19 = arith.constant 0.000000e+00 : f32
    %54 = vector.broadcast %cst_19 : f32 to vector<8x128xf32>
    %55 = arith.maximumf %53, %54 : vector<8x128xf32>
    %c0_20 = arith.constant 0 : index
    %c0_21 = arith.constant 0 : index
    %56 = vector.load %arg3[%c0_20, %c0_21] : memref<128x128xf32, #tpu.memory_space<vmem>>, vector<128x128xf32>
    %cst_22 = arith.constant dense<0.000000e+00> : vector<8x128xf32>
    %57 = tpu.matmul %55, %56, %cst_22 {dimension_numbers = #tpu.dot_dimension_numbers<[1], [0], [0], [1], [0, 0, 1, 1], [], []>} : vector<8x128xf32>, vector<128x128xf32>, vector<8x128xf32> -> vector<8x128xf32>
    %58 = vector.extract_strided_slice %0 {offsets = [4, 0], sizes = [1, 128], strides = [1, 1]} : vector<8x128xf32> to vector<1x128xf32>
    %59 = vector.extract_strided_slice %0 {offsets = [5, 0], sizes = [1, 128], strides = [1, 1]} : vector<8x128xf32> to vector<1x128xf32>
    %cst_23 = arith.constant dense<0.000000e+00> : vector<128xf32>
    %60 = vector.multi_reduction <add>, %57, %cst_23 [0] : vector<8x128xf32> to vector<128xf32>
    %61 = vector.shape_cast %60 : vector<128xf32> to vector<1x128xf32>
    %cst_24 = arith.constant 1.250000e-01 : f32
    %62 = vector.broadcast %cst_24 : f32 to vector<1x128xf32>
    %63 = arith.mulf %61, %62 : vector<1x128xf32>
    %64 = arith.mulf %57, %57 : vector<8x128xf32>
    %cst_25 = arith.constant dense<0.000000e+00> : vector<128xf32>
    %65 = vector.multi_reduction <add>, %64, %cst_25 [0] : vector<8x128xf32> to vector<128xf32>
    %66 = vector.shape_cast %65 : vector<128xf32> to vector<1x128xf32>
    %cst_26 = arith.constant 1.250000e-01 : f32
    %67 = vector.broadcast %cst_26 : f32 to vector<1x128xf32>
    %68 = arith.mulf %66, %67 : vector<1x128xf32>
    %69 = arith.mulf %63, %63 : vector<1x128xf32>
    %70 = arith.subf %68, %69 : vector<1x128xf32>
    %cst_27 = arith.constant 9.99999974E-6 : f32
    %71 = vector.broadcast %cst_27 : f32 to vector<1x128xf32>
    %72 = arith.addf %70, %71 : vector<1x128xf32>
    %73 = math.rsqrt %72 : vector<1x128xf32>
    %74 = arith.mulf %58, %73 : vector<1x128xf32>
    %75 = arith.mulf %63, %74 : vector<1x128xf32>
    %76 = arith.subf %59, %75 : vector<1x128xf32>
    %77 = vector.broadcast %74 : vector<1x128xf32> to vector<8x128xf32>
    %78 = arith.mulf %57, %77 : vector<8x128xf32>
    %79 = vector.broadcast %76 : vector<1x128xf32> to vector<8x128xf32>
    %80 = arith.addf %78, %79 : vector<8x128xf32>
    %cst_28 = arith.constant 0.000000e+00 : f32
    %81 = vector.broadcast %cst_28 : f32 to vector<8x128xf32>
    %82 = arith.maximumf %80, %81 : vector<8x128xf32>
    %c0_29 = arith.constant 0 : index
    %c0_30 = arith.constant 0 : index
    %83 = vector.load %arg4[%c0_29, %c0_30] : memref<128x128xf32, #tpu.memory_space<vmem>>, vector<128x128xf32>
    %cst_31 = arith.constant dense<0.000000e+00> : vector<8x128xf32>
    %84 = tpu.matmul %82, %83, %cst_31 {dimension_numbers = #tpu.dot_dimension_numbers<[1], [0], [0], [1], [0, 0, 1, 1], [], []>} : vector<8x128xf32>, vector<128x128xf32>, vector<8x128xf32> -> vector<8x128xf32>
    %85 = vector.extract_strided_slice %0 {offsets = [6, 0], sizes = [1, 128], strides = [1, 1]} : vector<8x128xf32> to vector<1x128xf32>
    %86 = vector.broadcast %85 : vector<1x128xf32> to vector<8x128xf32>
    %87 = arith.addf %84, %86 : vector<8x128xf32>
    %88 = math.tanh %87 : vector<8x128xf32>
    %c0_32 = arith.constant 0 : index
    %c0_33 = arith.constant 0 : index
    %89 = vector.load %arg6[%c0_32, %c0_33] : memref<8x128xf32, #tpu.memory_space<vmem>>, vector<8x128xf32>
    tpu.vector_store %arg6[%c0_32, %c0_33], %88 {strides = array<i32>} : memref<8x128xf32, #tpu.memory_space<vmem>>, vector<8x128xf32>,
    return
  }
}

</mosaic_0001>

<bundles_post_ra>
// kernel: tpu_custom_call.1
= control target key start
LH: loop header
LB: loop body
LE: loop exit
PB: predicated region body
PF: predicated region fallthrough
CT: control target
= control target key end

     0   :  { %11 = vsyncpa [#allocation3], 0  ;;  %s1089_s0 = inlined_call_operand.hbm [shape: f32[8,128], index: 0, kind: input, shape index: {}]   ;;  %s1090_s1 = inlined_call_operand.hbm [shape: f32[128,128], index: 1, kind: input, shape index: {}]   ;;  %s1091_s2 = inlined_call_operand.hbm [shape: f32[128,128], index: 2, kind: input, shape index: {}]   ;;  %s1092_s3 = inlined_call_operand.hbm [shape: f32[128,128], index: 3, kind: input, shape index: {}]   ;;  %s1093_s4 = inlined_call_operand.hbm [shape: f32[128,128], index: 4, kind: input, shape index: {}]   ;;  %s1094_s5 = inlined_call_operand.vmem [shape: f32[8,128], index: 5, kind: input, shape index: {}]   ;;  %s1095_s6 = inlined_call_operand.hbm [shape: f32[8,128], index: 6, kind: output, shape index: {}]  }
   0x1   :  { %12 = vsyncpa [#allocation6], 0 }
   0x2   :  { %13 = vsyncpa [#allocation9], 0 }
   0x3   :  { %14 = vsyncpa [#allocation4], 0  ;;  %s921_s21 = smov [#allocation5]  }
   0x4   :  { %s30_s22 = sshll.u32 %s921_s21, 4  ;;  %s31_s22 = int_to_ptr.vmem [resolvable:$true] %s30_s22 }
   0x5   :  { %s801_s23 = scalar_lea.vmem %s31_s22, 2048  ;;  %p806_p1 = scmp.lt.s32.totalorder %s31_s22, %s31_s22 }
   0x6   :  { %p802_p0 = scmp.ne.s32.totalorder %s31_s22, %s801_s23  ;;  %p807_p2 = scmp.lt.s32.totalorder %s801_s23, %s801_s23 }
   0x8   :  { %p808_p3 = por %p807_p2, %p806_p1 }
   0xa   :  { %p809_p4 = pnand %p808_p3, %p802_p0 }
   0xc   :  { %812 = shalt.err (!%p809_p4)
}
   0xd   :  { %s922_s24 = smov 128   ;;  %s923_s25 = smov 8  }
   0xe   :  { %36 = dma.hbm_to_vmem [thread:$0]  %s1090_s1, 2048, %s31_s22, [#allocation6], %s922_s24, %s922_s24, %s923_s25  }
   0xf   :  { %s924_s28 = smov [#allocation8]   ;;  %s925_s30 = smov [#allocation2]  }
  0x10   :  { %s54_s29 = sshll.u32 %s924_s28, 4  ;;  %s21_s7 = sshll.u32 %s925_s30, 4  ;;  %s55_s29 = int_to_ptr.vmem [resolvable:$true] %s54_s29  ;;  %s22_s7 = int_to_ptr.vmem [resolvable:$true] %s21_s7 }
  0x11   :  { %s821_s8 = scalar_lea.vmem %s55_s29, 2048  ;;  %p826_p6 = scmp.lt.s32.totalorder %s55_s29, %s55_s29 }
  0x12   :  { %p822_p5 = scmp.ne.s32.totalorder %s55_s29, %s821_s8  ;;  %p827_p7 = scmp.lt.s32.totalorder %s821_s8, %s821_s8 }
  0x14   :  { %p828_p8 = por %p827_p7, %p826_p6 }
  0x16   :  { %p829_p9 = pnand %p828_p8, %p822_p5 }
  0x18   :  { %832 = shalt.err (!%p829_p9)
}
  0x19   :  { %60 = dma.hbm_to_vmem [thread:$0]  %s1092_s3, 2048, %s55_s29, [#allocation9], %s922_s24, %s922_s24, %s923_s25  }
  0x1a   :  { %s841_s1 = scalar_lea.vmem %s22_s7, 128  ;;  %p846_p11 = scmp.lt.s32.totalorder %s22_s7, %s22_s7 }
  0x1b   :  { %p842_p10 = scmp.ne.s32.totalorder %s22_s7, %s841_s1  ;;  %p847_p12 = scmp.lt.s32.totalorder %s841_s1, %s841_s1 }
  0x1d   :  { %p848_p13 = por %p847_p12, %p846_p11 }
  0x1f   :  { %p849_p0 = pnand %p848_p13, %p842_p10 }
  0x21   :  { %852 = shalt.err (!%p849_p0)
}
  0x22   :  { %24 = dma.hbm_to_vmem [thread:$0]  %s1089_s0, 128, %s22_s7, [#allocation3]  }
  0x23   :  { %s926_s13 = smov [#allocation7]   ;;  %s927_s15 = smov [#allocation10]  }
  0x24   :  { %s42_s14 = sshll.u32 %s926_s13, 4  ;;  %s66_s16 = sshll.u32 %s927_s15, 4  ;;  %s43_s14 = int_to_ptr.vmem [resolvable:$true] %s42_s14  ;;  %s67_s16 = int_to_ptr.vmem [resolvable:$true] %s66_s16 }
  0x25   :  { %s861_s17 = scalar_lea.vmem %s43_s14, 2048  ;;  %p866_p2 = scmp.lt.s32.totalorder %s43_s14, %s43_s14 }
  0x26   :  { %p862_p1 = scmp.ne.s32.totalorder %s43_s14, %s861_s17  ;;  %p867_p3 = scmp.lt.s32.totalorder %s861_s17, %s861_s17 }
  0x28   :  { %p868_p4 = por %p867_p3, %p866_p2 }
  0x2a   :  { %p869_p5 = pnand %p868_p4, %p862_p1 }
  0x2c   :  { %872 = shalt.err (!%p869_p5)
}
  0x2d   :  { %48 = dma.hbm_to_vmem [thread:$0]  %s1091_s2, 2048, %s43_s14, [#allocation6], %s922_s24, %s922_s24, %s923_s25  }
  0x2e   :  { %s881_s0 = scalar_lea.vmem %s67_s16, 2048  ;;  %p886_p7 = scmp.lt.s32.totalorder %s67_s16, %s67_s16 }
  0x2f   :  { %p882_p6 = scmp.ne.s32.totalorder %s67_s16, %s881_s0  ;;  %p887_p8 = scmp.lt.s32.totalorder %s881_s0, %s881_s0 }
  0x31   :  { %p888_p9 = por %p887_p8, %p886_p7 }
  0x33   :  { %p889_p10 = pnand %p888_p9, %p882_p6 }
  0x35   :  { %892 = shalt.err (!%p889_p10)
}
  0x36   :  { %72 = dma.hbm_to_vmem [thread:$0]  %s1093_s4, 2048, %s67_s16, [#allocation9], %s922_s24, %s922_s24, %s923_s25  }
  0x37   :  { %913 = dma.done.wait [#allocation3], 128  }
  0x38   :  { %914 = vsyncadd [#allocation3], 4294967168 }
  0x39   :  { %915 = dma.done.wait [#allocation6], 4096  }
  0x3a   :  { %916 = vsyncadd [#allocation6], 4294963200 }
  0x3b   :  { %917 = dma.done.wait [#allocation9], 4096  }
  0x3c   :  { %918 = vsyncadd [#allocation9], 4294963200  ;;  %v928_v0 = vmov 0.0   ;;  %vm929_vm0 = vmmov 0   ;;  %v107_v1 = vld [vmem:[#allocation5 + $0x78] sm:$0xff]  ;;  %v106_v2 = vld [vmem:[#allocation5 + $0x70] sm:$0xff]  ;;  %v203_v54 = vlaneseq }
  0x3d   :  { %635 = vmatprep.subr.mxu0 %v928_v0  ;;  %667 = vmatprep.mubr.msk.f32.mxu0 %vm929_vm0, %v928_v0  ;;  %v105_v3 = vld [vmem:[#allocation5 + $0x68] sm:$0xff]  ;;  %v104_v4 = vld [vmem:[#allocation5 + $0x60] sm:$0xff]  ;;  %v103_v5 = vld [vmem:[#allocation5 + $0x58] sm:$0xff] }
  0x3e   :  { %670 = vmatprep.subr.mxu1 %v928_v0  ;;  %702 = vmatprep.mubr.msk.f32.mxu1 %vm929_vm0, %v928_v0  ;;  %v102_v6 = vld [vmem:[#allocation5 + $0x50] sm:$0xff]  ;;  %v101_v7 = vld [vmem:[#allocation5 + $0x48] sm:$0xff]  ;;  %v100_v8 = vld [vmem:[#allocation5 + $0x40] sm:$0xff]  ;;  %v1033_v55 = vshrl.u32 %v203_v54, 7 }
  0x3f   :  { %636 = vmatpush3.msra.mxu0 %v107_v1  ;;  %v99_v9 = vld [vmem:[#allocation5 + $0x38] sm:$0xff]  ;;  %v98_v10 = vld [vmem:[#allocation5 + $0x30] sm:$0xff]  ;;  %v97_v11 = vld [vmem:[#allocation5 + $0x28] sm:$0xff] }
  0x40   :  { %637 = vmatprep.subr.mxu0 %v928_v0  ;;  %v96_v12 = vld [vmem:[#allocation5 + $0x20] sm:$0xff]  ;;  %v95_v13 = vld [vmem:[#allocation5 + $0x18] sm:$0xff]  ;;  %v94_v14 = vld [vmem:[#allocation5 + $0x10] sm:$0xff]  ;;  %v205_v59 = vsub.s32 0, %v1033_v55  ;;  %v210_v63 = vsub.s32 1, %v1033_v55 }
  0x41   :  { %638 = vmatpush3.msra.mxu0 %v106_v2  ;;  %v93_v15 = vld [vmem:[#allocation5 + $0x8] sm:$0xff]  ;;  %v92_v16 = vld [vmem:[#allocation5] sm:$0xff]  ;;  %v91_v17 = vld [vmem:[#allocation2] sm:$0xff] }
  0x42   :  { %639 = vmatprep.subr.mxu0 %v928_v0  ;;  %v229_v18 = vld [vmem:[#allocation7 + $0x78] sm:$0xff]  ;;  %v228_v19 = vld [vmem:[#allocation7 + $0x70] sm:$0xff]  ;;  %v227_v20 = vld [vmem:[#allocation7 + $0x68] sm:$0xff] }
  0x43   :  { %640 = vmatpush3.msra.mxu0 %v105_v3  ;;  %671 = vmatpush3.msra.mxu1 %v229_v18  ;;  %v226_v21 = vld [vmem:[#allocation7 + $0x60] sm:$0xff]  ;;  %v225_v22 = vld [vmem:[#allocation7 + $0x58] sm:$0xff]  ;;  %v224_v23 = vld [vmem:[#allocation7 + $0x50] sm:$0xff] }
  0x44   :  { %641 = vmatprep.subr.mxu0 %v928_v0  ;;  %672 = vmatprep.subr.mxu1 %v928_v0  ;;  %v223_v24 = vld [vmem:[#allocation7 + $0x48] sm:$0xff]  ;;  %v222_v25 = vld [vmem:[#allocation7 + $0x40] sm:$0xff]  ;;  %v221_v26 = vld [vmem:[#allocation7 + $0x38] sm:$0xff] }
  0x45   :  { %642 = vmatpush3.msra.mxu0 %v104_v4  ;;  %673 = vmatpush3.msra.mxu1 %v228_v19  ;;  %v220_v27 = vld [vmem:[#allocation7 + $0x30] sm:$0xff]  ;;  %v219_v28 = vld [vmem:[#allocation7 + $0x28] sm:$0xff]  ;;  %v218_v29 = vld [vmem:[#allocation7 + $0x20] sm:$0xff] }
  0x46   :  { %643 = vmatprep.subr.mxu0 %v928_v0  ;;  %674 = vmatprep.subr.mxu1 %v928_v0  ;;  %v217_v30 = vld [vmem:[#allocation7 + $0x18] sm:$0xff]  ;;  %v216_v31 = vld [vmem:[#allocation7 + $0x10] sm:$0xff]  ;;  %v215_v32 = vld [vmem:[#allocation7 + $0x8] sm:$0xff] }
  0x47   :  { %644 = vmatpush3.msra.mxu0 %v103_v5  ;;  %675 = vmatpush3.msra.mxu1 %v227_v20  ;;  %v214_v33 = vld [vmem:[#allocation7] sm:$0xff]  ;;  %v1038_v56 = vld [vmem:[%s1094_s5] sm:$0xff]  ;;  %v338_v19 = vld [vmem:[#allocation8 + $0x10] sm:$0xff]  ;;  %s930_s5 = smov [#allocation11]  }
  0x48   :  { %645 = vmatprep.subr.mxu0 %v928_v0  ;;  %676 = vmatprep.subr.mxu1 %v928_v0  ;;  %v339_v18 = vld [vmem:[#allocation8 + $0x18] sm:$0xff]  ;;  %v337_v20 = vld [vmem:[#allocation8 + $0x8] sm:$0xff]  ;;  %s556_s21 = sshll.u32 %s930_s5, 4  ;;  %s557_s21 = int_to_ptr.vmem [resolvable:$true] %s556_s21 }
  0x49   :  { %646 = vmatpush3.msra.mxu0 %v102_v6  ;;  %677 = vmatpush3.msra.mxu1 %v226_v21  ;;  %v351_v6 = vld [vmem:[#allocation8 + $0x78] sm:$0xff]  ;;  %v336_v21 = vld [vmem:[#allocation8] sm:$0xff]  ;;  %s893_s22 = scalar_lea.vmem %s557_s21, 128  ;;  %p898_p12 = scmp.lt.s32.totalorder %s557_s21, %s557_s21 }
  0x4a   :  { %647 = vmatprep.subr.mxu0 %v928_v0  ;;  %678 = vmatprep.subr.mxu1 %v928_v0  ;;  %v473_v54 = vld [vmem:[#allocation10 + $0x78] sm:$0xff]  ;;  %p894_p11 = scmp.ne.s32.totalorder %s557_s21, %s893_s22  ;;  %p899_p13 = scmp.lt.s32.totalorder %s893_s22, %s893_s22 }
  0x4b   :  { %648 = vmatpush3.msra.mxu0 %v101_v7  ;;  %679 = vmatpush3.msra.mxu1 %v225_v22  ;;  %v350_v7 = vld [vmem:[#allocation8 + $0x70] sm:$0xff] }
  0x4c   :  { %649 = vmatprep.subr.mxu0 %v928_v0  ;;  %680 = vmatprep.subr.mxu1 %v928_v0  ;;  %p900_p0 = por %p899_p13, %p898_p12 }
  0x4d   :  { %650 = vmatpush3.msra.mxu0 %v100_v8  ;;  %681 = vmatpush3.msra.mxu1 %v224_v23  ;;  %v349_v8 = vld [vmem:[#allocation8 + $0x68] sm:$0xff] }
  0x4e   :  { %651 = vmatprep.subr.mxu0 %v928_v0  ;;  %682 = vmatprep.subr.mxu1 %v928_v0  ;;  %p901_p1 = pnand %p900_p0, %p894_p11 }
  0x4f   :  { %652 = vmatpush3.msra.mxu0 %v99_v9  ;;  %683 = vmatpush3.msra.mxu1 %v223_v24  ;;  %v348_v9 = vld [vmem:[#allocation8 + $0x60] sm:$0xff] }
  0x50   :  { %653 = vmatprep.subr.mxu0 %v928_v0  ;;  %684 = vmatprep.subr.mxu1 %v928_v0 }
  0x51   :  { %654 = vmatpush3.msra.mxu0 %v98_v10  ;;  %685 = vmatpush3.msra.mxu1 %v222_v25  ;;  %v347_v10 = vld [vmem:[#allocation8 + $0x58] sm:$0xff] }
  0x52   :  { %655 = vmatprep.subr.mxu0 %v928_v0  ;;  %686 = vmatprep.subr.mxu1 %v928_v0 }
  0x53   :  { %656 = vmatpush3.msra.mxu0 %v97_v11  ;;  %687 = vmatpush3.msra.mxu1 %v221_v26  ;;  %v346_v11 = vld [vmem:[#allocation8 + $0x50] sm:$0xff] }
  0x54   :  { %657 = vmatprep.subr.mxu0 %v928_v0  ;;  %688 = vmatprep.subr.mxu1 %v928_v0 }
  0x55   :  { %658 = vmatpush3.msra.mxu0 %v96_v12  ;;  %689 = vmatpush3.msra.mxu1 %v220_v27  ;;  %v345_v12 = vld [vmem:[#allocation8 + $0x48] sm:$0xff] }
  0x56   :  { %659 = vmatprep.subr.mxu0 %v928_v0  ;;  %690 = vmatprep.subr.mxu1 %v928_v0 }
  0x57   :  { %660 = vmatpush3.msra.mxu0 %v95_v13  ;;  %691 = vmatpush3.msra.mxu1 %v219_v28  ;;  %v344_v13 = vld [vmem:[#allocation8 + $0x40] sm:$0xff] }
  0x58   :  { %661 = vmatprep.subr.mxu0 %v928_v0  ;;  %692 = vmatprep.subr.mxu1 %v928_v0 }
  0x59   :  { %662 = vmatpush3.msra.mxu0 %v94_v14  ;;  %693 = vmatpush3.msra.mxu1 %v218_v29  ;;  %v343_v14 = vld [vmem:[#allocation8 + $0x38] sm:$0xff] }
  0x5a   :  { %663 = vmatprep.subr.mxu0 %v928_v0  ;;  %694 = vmatprep.subr.mxu1 %v928_v0 }
  0x5b   :  { %664 = vmatpush3.msra.mxu0 %v93_v15  ;;  %695 = vmatpush3.msra.mxu1 %v217_v30  ;;  %v342_v15 = vld [vmem:[#allocation8 + $0x30] sm:$0xff] }
  0x5c   :  { %665 = vmatprep.subr.mxu0 %v928_v0  ;;  %696 = vmatprep.subr.mxu1 %v928_v0 }
  0x5d   :  { %666 = vmatpush3.msra.mxu0 %v92_v16  ;;  %697 = vmatpush3.msra.mxu1 %v216_v31  ;;  %v341_v16 = vld [vmem:[#allocation8 + $0x28] sm:$0xff] }
  0x5e   :  { %668 = vmatmul.mubr.f32.vlgmr.msra.gmra.mxu0 %v91_v17  ;;  %705 = vmatprep.subr.mxu0 %v928_v0  ;;  %v340_v17 = vld [vmem:[#allocation8 + $0x20] sm:$0xff] }
  0x5f   :  { %737 = vmatprep.mubr.msk.f32.mxu0 %vm929_vm0, %v928_v0  ;;  %698 = vmatprep.subr.mxu1 %v928_v0 }
  0x60   :  { %699 = vmatpush3.msra.mxu1 %v215_v32  ;;  %706 = vmatpush3.msra.mxu0 %v351_v6  ;;  %v460_v6 = vld [vmem:[#allocation10 + $0x10] sm:$0xff] }
  0x61   :  { %700 = vmatprep.subr.mxu1 %v928_v0  ;;  %707 = vmatprep.subr.mxu0 %v928_v0 }
  0x62   :  { %701 = vmatpush3.msra.mxu1 %v214_v33  ;;  %708 = vmatpush3.msra.mxu0 %v350_v7  ;;  %v459_v7 = vld [vmem:[#allocation10 + $0x8] sm:$0xff] }
  0x63   :  { %740 = vmatprep.subr.mxu1 %v928_v0  ;;  %709 = vmatprep.subr.mxu0 %v928_v0 }
  0x64   :  { %710 = vmatpush3.msra.mxu0 %v349_v8  ;;  %v458_v8 = vld [vmem:[#allocation10] sm:$0xff] }
  0x65   :  { %711 = vmatprep.subr.mxu0 %v928_v0 }
  0x66   :  { %712 = vmatpush3.msra.mxu0 %v348_v9 }
  0x67   :  { %713 = vmatprep.subr.mxu0 %v928_v0 }
  0x68   :  { %714 = vmatpush3.msra.mxu0 %v347_v10 }
  0x69   :  { %715 = vmatprep.subr.mxu0 %v928_v0 }
  0x6a   :  { %716 = vmatpush3.msra.mxu0 %v346_v11 }
  0x6b   :  { %717 = vmatprep.subr.mxu0 %v928_v0 }
  0x6c   :  { %718 = vmatpush3.msra.mxu0 %v345_v12 }
  0x6d   :  { %719 = vmatprep.subr.mxu0 %v928_v0 }
  0x6e   :  { %720 = vmatpush3.msra.mxu0 %v344_v13 }
  0x6f   :  { %721 = vmatprep.subr.mxu0 %v928_v0 }
  0x70   :  { %722 = vmatpush3.msra.mxu0 %v343_v14 }
  0x71   :  { %723 = vmatprep.subr.mxu0 %v928_v0 }
  0x72   :  { %724 = vmatpush3.msra.mxu0 %v342_v15 }
  0x73   :  { %725 = vmatprep.subr.mxu0 %v928_v0 }
  0x74   :  { %726 = vmatpush3.msra.mxu0 %v341_v16 }
  0x75   :  { %727 = vmatprep.subr.mxu0 %v928_v0 }
  0x76   :  { %728 = vmatpush3.msra.mxu0 %v340_v17 }
  0x77   :  { %729 = vmatprep.subr.mxu0 %v928_v0 }
  0x78   :  { %730 = vmatpush3.msra.mxu0 %v339_v18 }
  0x79   :  { %731 = vmatprep.subr.mxu0 %v928_v0 }
  0x7a   :  { %732 = vmatpush3.msra.mxu0 %v338_v19 }
  0x7b   :  { %733 = vmatprep.subr.mxu0 %v928_v0 }
  0x7c   :  { %734 = vmatpush3.msra.mxu0 %v337_v20 }
  0x7d   :  { %735 = vmatprep.subr.mxu0 %v928_v0 }
  0x7e   :  { %736 = vmatpush3.msra.mxu0 %v336_v21 }
 0x11e   :  { %v174_v34 = vpop.f32.mrf.mxu0 }
 0x11f   :  { %v178_v35 = vrot.slane %v174_v34, 4  ;;  %v185_v36 = vmul.f32 %v174_v34, %v174_v34 }
 0x120   :  { %v669_v37 = vpop.f32.mrf.mxu0 }
 0x121   :  { %v179_v38 = vadd.f32 %v178_v35, %v174_v34  ;;  %v186_v39 = vrot.slane %v185_v36, 4 }
 0x123   :  { %v180_v40 = vrot.slane %v179_v38, 2  ;;  %v187_v41 = vadd.f32 %v186_v39, %v185_v36 }
 0x125   :  { %v181_v42 = vadd.f32 %v180_v40, %v179_v38  ;;  %v188_v43 = vrot.slane %v187_v41, 2 }
 0x127   :  { %v182_v44 = vrot.slane %v181_v42, 1  ;;  %v189_v45 = vadd.f32 %v188_v43, %v187_v41 }
 0x129   :  { %v183_v46 = vadd.f32 %v182_v44, %v181_v42  ;;  %v190_v47 = vrot.slane %v189_v45, 1  ;;  %v327_v44 = vsub.s32 2, %v1033_v55 }
 0x12b   :  { %v184_v48 = vmul.f32 0.125, %v183_v46  ;;  %v191_v49 = vadd.f32 %v190_v47, %v189_v45 }
 0x12d   :  { %v192_v50 = vmul.f32 0.125, %v191_v49  ;;  %v193_v51 = vmul.f32 %v184_v48, %v184_v48 }
 0x12f   :  { %v194_v52 = vsub.f32 %v192_v50, %v193_v51 }
 0x131   :  { %v195_v53 = vadd.f32 1e-05, %v194_v52 }
 0x133   :  { %785 = vrsqrt.f32 %v195_v53 }
 0x140   :  { %v786_v57 = vpop.eup %785 }
 0x141   :  { %v197_v58 = vmul.f32 %v786_v57, %v1038_v56  ;;  %v472_v57 = vld [vmem:[#allocation10 + $0x70] sm:$0xff] }
 0x143   :  { %v198_v60 = vmul.f32 %v197_v58, %v184_v48  ;;  %v206_v61 = vrot.slane %v197_v58, %v205_v59  ;;  %v332_v48 = vsub.s32 3, %v1033_v55  ;;  %v471_v58 = vld [vmem:[#allocation10 + $0x68] sm:$0xff]  ;;  %v470_v59 = vld [vmem:[#allocation10 + $0x60] sm:$0xff] }
 0x145   :  { %v200_v62 = vrot.slane %v198_v60, 7  ;;  %v207_v2 = vmul.f32 %v206_v61, %v174_v34  ;;  %v469_v60 = vld [vmem:[#allocation10 + $0x58] sm:$0xff]  ;;  %v468_v61 = vld [vmem:[#allocation10 + $0x50] sm:$0xff] }
 0x147   :  { %v202_v1 = vsub.f32 %v1038_v56, %v200_v62  ;;  %v467_v62 = vld [vmem:[#allocation10 + $0x48] sm:$0xff] }
 0x149   :  { %v211_v3 = vrot.slane %v202_v1, %v210_v63  ;;  %v466_v63 = vld [vmem:[#allocation10 + $0x40] sm:$0xff]  ;;  %v465_v1 = vld [vmem:[#allocation10 + $0x38] sm:$0xff] }
 0x14b   :  { %v212_v4 = vadd.f32 %v211_v3, %v207_v2  ;;  %v464_v2 = vld [vmem:[#allocation10 + $0x30] sm:$0xff]  ;;  %v463_v3 = vld [vmem:[#allocation10 + $0x28] sm:$0xff] }
 0x14d   :  { %v213_v5 = vmax.f32 %v212_v4, 0.0  ;;  %v462_v4 = vld [vmem:[#allocation10 + $0x20] sm:$0xff] }
 0x14f   :  { %703 = vmatmul.mubr.f32.vlgmr.msra.gmra.mxu1 %v213_v5  ;;  %v461_v5 = vld [vmem:[#allocation10 + $0x18] sm:$0xff] }
 0x150   :  { %772 = vmatprep.mubr.msk.f32.mxu1 %vm929_vm0, %v928_v0  ;;  %741 = vmatpush3.msra.mxu1 %v473_v54 }
 0x151   :  { %742 = vmatprep.subr.mxu1 %v928_v0 }
 0x152   :  { %743 = vmatpush3.msra.mxu1 %v472_v57 }
 0x153   :  { %744 = vmatprep.subr.mxu1 %v928_v0 }
 0x154   :  { %745 = vmatpush3.msra.mxu1 %v471_v58 }
 0x155   :  { %746 = vmatprep.subr.mxu1 %v928_v0 }
 0x156   :  { %747 = vmatpush3.msra.mxu1 %v470_v59 }
 0x157   :  { %748 = vmatprep.subr.mxu1 %v928_v0 }
 0x158   :  { %749 = vmatpush3.msra.mxu1 %v469_v60 }
 0x159   :  { %750 = vmatprep.subr.mxu1 %v928_v0 }
 0x15a   :  { %751 = vmatpush3.msra.mxu1 %v468_v61 }
 0x15b   :  { %752 = vmatprep.subr.mxu1 %v928_v0 }
 0x15c   :  { %753 = vmatpush3.msra.mxu1 %v467_v62 }
 0x15d   :  { %754 = vmatprep.subr.mxu1 %v928_v0 }
 0x15e   :  { %755 = vmatpush3.msra.mxu1 %v466_v63 }
 0x15f   :  { %756 = vmatprep.subr.mxu1 %v928_v0 }
 0x160   :  { %757 = vmatpush3.msra.mxu1 %v465_v1 }
 0x161   :  { %758 = vmatprep.subr.mxu1 %v928_v0 }
 0x162   :  { %759 = vmatpush3.msra.mxu1 %v464_v2 }
 0x163   :  { %760 = vmatprep.subr.mxu1 %v928_v0 }
 0x164   :  { %761 = vmatpush3.msra.mxu1 %v463_v3 }
 0x165   :  { %762 = vmatprep.subr.mxu1 %v928_v0 }
 0x166   :  { %763 = vmatpush3.msra.mxu1 %v462_v4 }
 0x167   :  { %764 = vmatprep.subr.mxu1 %v928_v0 }
 0x168   :  { %765 = vmatpush3.msra.mxu1 %v461_v5 }
 0x169   :  { %766 = vmatprep.subr.mxu1 %v928_v0 }
 0x16a   :  { %767 = vmatpush3.msra.mxu1 %v460_v6 }
 0x16b   :  { %768 = vmatprep.subr.mxu1 %v928_v0 }
 0x16c   :  { %769 = vmatpush3.msra.mxu1 %v459_v7 }
 0x16d   :  { %770 = vmatprep.subr.mxu1 %v928_v0 }
 0x16e   :  { %771 = vmatpush3.msra.mxu1 %v458_v8 }
 0x20f   :  { %v296_v22 = vpop.f32.mrf.mxu1 }
 0x210   :  { %v300_v23 = vrot.slane %v296_v22, 4  ;;  %v307_v24 = vmul.f32 %v296_v22, %v296_v22 }
 0x211   :  { %v704_v25 = vpop.f32.mrf.mxu1 }
 0x212   :  { %v301_v26 = vadd.f32 %v300_v23, %v296_v22  ;;  %v308_v27 = vrot.slane %v307_v24, 4 }
 0x214   :  { %v302_v28 = vrot.slane %v301_v26, 2  ;;  %v309_v29 = vadd.f32 %v308_v27, %v307_v24 }
 0x216   :  { %v303_v30 = vadd.f32 %v302_v28, %v301_v26  ;;  %v310_v31 = vrot.slane %v309_v29, 2 }
 0x218   :  { %v304_v32 = vrot.slane %v303_v30, 1  ;;  %v311_v33 = vadd.f32 %v310_v31, %v309_v29 }
 0x21a   :  { %v305_v34 = vadd.f32 %v304_v32, %v303_v30  ;;  %v312_v35 = vrot.slane %v311_v33, 1  ;;  %v449_v30 = vsub.s32 4, %v1033_v55 }
 0x21c   :  { %v306_v36 = vmul.f32 0.125, %v305_v34  ;;  %v313_v37 = vadd.f32 %v312_v35, %v311_v33  ;;  %v454_v34 = vsub.s32 5, %v1033_v55 }
 0x21e   :  { %v314_v38 = vmul.f32 0.125, %v313_v37  ;;  %v315_v39 = vmul.f32 %v306_v36, %v306_v36 }
 0x220   :  { %v316_v40 = vsub.f32 %v314_v38, %v315_v39 }
 0x222   :  { %v317_v41 = vadd.f32 1e-05, %v316_v40  ;;  %v476_v40 = vsub.s32 6, %v1033_v55 }
 0x224   :  { %787 = vrsqrt.f32 %v317_v41  ;;  %v477_v41 = vrot.slane %v1038_v56, %v476_v40 }
 0x231   :  { %v788_v42 = vpop.eup %787 }
 0x232   :  { %v319_v43 = vmul.f32 %v788_v42, %v1038_v56 }
 0x234   :  { %v320_v45 = vmul.f32 %v319_v43, %v306_v36  ;;  %v328_v47 = vrot.slane %v319_v43, %v327_v44 }
 0x236   :  { %v322_v46 = vrot.slane %v320_v45, 7  ;;  %v329_v50 = vmul.f32 %v328_v47, %v296_v22 }
 0x238   :  { %v324_v49 = vsub.f32 %v1038_v56, %v322_v46 }
 0x23a   :  { %v333_v51 = vrot.slane %v324_v49, %v332_v48 }
 0x23c   :  { %v334_v52 = vadd.f32 %v333_v51, %v329_v50 }
 0x23e   :  { %v335_v53 = vmax.f32 %v334_v52, 0.0 }
 0x240   :  { %738 = vmatmul.mubr.f32.vlgmr.msra.gmra.mxu0 %v335_v53 }
 0x300   :  { %v418_v9 = vpop.f32.mrf.mxu0 }
 0x301   :  { %v422_v10 = vrot.slane %v418_v9, 4  ;;  %v429_v11 = vmul.f32 %v418_v9, %v418_v9 }
 0x302   :  { %v739_v12 = vpop.f32.mrf.mxu0 }
 0x303   :  { %v423_v13 = vadd.f32 %v422_v10, %v418_v9  ;;  %v430_v14 = vrot.slane %v429_v11, 4 }
 0x305   :  { %v424_v15 = vrot.slane %v423_v13, 2  ;;  %v431_v16 = vadd.f32 %v430_v14, %v429_v11 }
 0x307   :  { %v425_v17 = vadd.f32 %v424_v15, %v423_v13  ;;  %v432_v18 = vrot.slane %v431_v16, 2 }
 0x309   :  { %v426_v19 = vrot.slane %v425_v17, 1  ;;  %v433_v20 = vadd.f32 %v432_v18, %v431_v16 }
 0x30b   :  { %v427_v21 = vadd.f32 %v426_v19, %v425_v17  ;;  %v434_v22 = vrot.slane %v433_v20, 1 }
 0x30d   :  { %v428_v23 = vmul.f32 0.125, %v427_v21  ;;  %v435_v24 = vadd.f32 %v434_v22, %v433_v20 }
 0x30f   :  { %v436_v25 = vmul.f32 0.125, %v435_v24  ;;  %v437_v26 = vmul.f32 %v428_v23, %v428_v23 }
 0x311   :  { %v438_v0 = vsub.f32 %v436_v25, %v437_v26 }
 0x313   :  { %v439_v27 = vadd.f32 1e-05, %v438_v0 }
 0x315   :  { %789 = vrsqrt.f32 %v439_v27 }
 0x322   :  { %v790_v28 = vpop.eup %789 }
 0x323   :  { %v441_v29 = vmul.f32 %v790_v28, %v1038_v56 }
 0x325   :  { %v442_v31 = vmul.f32 %v441_v29, %v428_v23  ;;  %v450_v33 = vrot.slane %v441_v29, %v449_v30 }
 0x327   :  { %v444_v32 = vrot.slane %v442_v31, 7  ;;  %v451_v36 = vmul.f32 %v450_v33, %v418_v9 }
 0x329   :  { %v446_v35 = vsub.f32 %v1038_v56, %v444_v32 }
 0x32b   :  { %v455_v37 = vrot.slane %v446_v35, %v454_v34 }
 0x32d   :  { %v456_v38 = vadd.f32 %v455_v37, %v451_v36 }
 0x32f   :  { %v457_v39 = vmax.f32 %v456_v38, 0.0 }
 0x331   :  { %773 = vmatmul.mubr.f32.vlgmr.msra.gmra.mxu1 %v457_v39 }
 0x3f1   :  { %v544_v42 = vpop.f32.mrf.mxu1 }
 0x3f2   :  { %v545_v43 = vadd.f32 %v544_v42, %v477_v41 }
 0x3f3   :  { %v774_v44 = vpop.f32.mrf.mxu1 }
 0x3f4   :  { %791 = vtanh.f32 %v545_v43 }
 0x401   :  { %v792_v45 = vpop.eup %791 }
 0x402   :  { %549 = vst [vmem:[#allocation11] sm:$0xff] %v792_v45 }
 0x403   :  { %904 = shalt.err (!%p901_p1)
}
 0x404   :  { %559 = dma.vmem_to_hbm [thread:$0]  %s557_s21, 128, %s1095_s6, [#allocation4]  }
 0x405   :  { %919 = dma.done.wait [#allocation4], 128  }
 0x406   :  { %920 = vsyncadd [#allocation4], 4294967168 }
 0x407   :  { %563 = vsyncpa [#allocation3], 1 }
 0x408   :  { %564 = vsyncpa [#allocation6], 1 }
 0x409   :  { %565 = vsyncpa [#allocation9], 1 }
 0x40a   :  { %566 = vsyncpa [#allocation4], 1 }

</bundles_post_ra>
